<compile_context>
chip_gen: v5e
topology: v5e:2x2
jax: 0.10.0
libtpu: 0.0.40
codegen_flags: <defaults>
</compile_context>

<pallas_src>
import jax
import jax.numpy as jnp
from jax import lax
from jax.experimental import pallas as pl
from jax.experimental.pallas import tpu as pltpu

_MIB = 1024 * 1024


def _clamp(v, lo, hi):
    return int(max(lo, min(hi, v)))


def _vmem_capacity_bytes():
    try:
        cap = int(pltpu.get_tpu_info().vmem_capacity_bytes)
        if cap > 0:
            return cap
    except Exception:
        pass
    return 128 * _MIB          # v5e/v6e default


def _num_tensorcores():
    try:
        info = pltpu.get_tpu_info()
        for name in ("num_cores", "core_count", "num_tensor_cores",
                     "tensor_core_count"):
            v = getattr(info, name, None)
            if isinstance(v, int) and v > 0:
                return v
    except Exception:
        pass
    return 1


# ---------------------------------------------------------------------------
# Fast path: Nb whole samples (Nb, C, HW) per grid step (fits VMEM).
# ---------------------------------------------------------------------------

def _rln_fused_kernel(eps, inv_n):
    def kernel(x_ref, wb_ref, out_ref, mean_ref, std_ref):
        xf = x_ref[...].astype(jnp.float32)                       # (Nb, C, HW)

        # exact two-pass statistics (data is resident in VMEM, extra sweep is
        # VPU-only): matches the reference's mean((x-mean)^2) formulation.
        s = jnp.sum(jnp.sum(xf, axis=2, keepdims=True), axis=1, keepdims=True)
        mean = s * inv_n                                          # (Nb, 1, 1)
        d = xf - mean
        var = jnp.sum(jnp.sum(d * d, axis=2, keepdims=True),
                      axis=1, keepdims=True) * inv_n
        inv_std = lax.rsqrt(var + eps)                            # EUP
        std = jnp.sqrt(var + eps)

        # packed params: wb[0] = weight, wb[1] = bias, each (C, 1) so the
        # broadcast against (Nb, C, HW) is a free lane splat (no transpose).
        w = wb_ref[0]                                             # (C, 1)
        b = wb_ref[1]                                             # (C, 1)
        scale = w * inv_std                                       # (Nb, C, 1)
        shift = b - mean * scale                                  # (Nb, C, 1)
        out_ref[...] = (xf * scale + shift).astype(out_ref.dtype)

        mean_ref[...] = mean[:, 0, :]                             # (Nb, 1)
        std_ref[...] = std[:, 0, :]

    return kernel


def _rln_fast(x2, wb, eps, nb, vmem_ceiling):
    N, C, HW = x2.shape
    n = C * HW
    x_bytes = x2.dtype.itemsize
    block_x = nb * C * HW * x_bytes
    block_f32 = nb * C * HW * 4

    # 2x double-buffered in + 2x out + ~3 f32 block temporaries + headroom.
    vmem_limit = _clamp(4 * block_x + 3 * block_f32 + 2 * _MIB,
                        16 * _MIB, vmem_ceiling)
    cost = pl.CostEstimate(flops=8 * N * C * HW,
                           transcendentals=2 * N,
                           bytes_accessed=2 * N * C * HW * x_bytes)

    out, mean, std = pl.pallas_call(
        _rln_fused_kernel(eps, 1.0 / n),
        out_shape=(
            jax.ShapeDtypeStruct((N, C, HW), x2.dtype),
            jax.ShapeDtypeStruct((N, 1), jnp.float32),
            jax.ShapeDtypeStruct((N, 1), jnp.float32),
        ),
        grid_spec=pltpu.PrefetchScalarGridSpec(
            num_scalar_prefetch=0,
            grid=(N // nb,),
            in_specs=[
                pl.BlockSpec((nb, C, HW), lambda i: (i, 0, 0)),
                pl.BlockSpec((2, C, 1), lambda i: (0, 0, 0)),
            ],
            out_specs=(
                pl.BlockSpec((nb, C, HW), lambda i: (i, 0, 0)),
                pl.BlockSpec((nb, 1), lambda i: (i, 0)),
                pl.BlockSpec((nb, 1), lambda i: (i, 0)),
            ),
        ),
        compiler_params=pltpu.CompilerParams(
            dimension_semantics=("parallel",),
            vmem_limit_bytes=vmem_limit),
        cost_estimate=cost,
    )(x2, wb)
    return out, mean, std


# ---------------------------------------------------------------------------
# Tiled path (large C*HW): stats pass + streaming normalize pass.
# ---------------------------------------------------------------------------

def _rln_stats_kernel(eps, inv_n, inv_c0, hw_total, hw_tile):
    ragged = (hw_total % hw_tile) != 0

    def kernel(x_ref, mean_ref, std_ref, c_ref, s_acc, ss_acc):
        t = pl.program_id(1)
        xf = x_ref[...].astype(jnp.float32)                   # (C, hw_tile)
        if ragged:
            col = lax.broadcasted_iota(jnp.int32, xf.shape, 1)
            valid = (t * hw_tile + col) < hw_total

        @pl.when(t == 0)
        def _():
            # cheap per-sample shift estimate = first tile's mean; any constant
            # shift keeps var = E[(x-c)^2] - (E[x-c])^2 exact but kills the
            # catastrophic cancellation of the unshifted single-pass form.
            x0 = jnp.where(valid, xf, 0.0) if ragged else xf
            c_ref[...] = jnp.sum(jnp.sum(x0, axis=0, keepdims=True),
                                 axis=1, keepdims=True) * inv_c0
            s_acc[...] = jnp.zeros_like(s_acc)
            ss_acc[...] = jnp.zeros_like(ss_acc)

        d = xf - c_ref[...]
        if ragged:
            d = jnp.where(valid, d, 0.0)
        # lane-dense accumulators: only a sublane reduce per tile, the single
        # cross-lane reduction happens once on the last tile.
        s_acc[...] += jnp.sum(d, axis=0, keepdims=True)        # (1, hw_tile)
        ss_acc[...] += jnp.sum(d * d, axis=0, keepdims=True)   # (1, hw_tile)

        @pl.when(t == pl.num_programs(1) - 1)
        def _():
            s = jnp.sum(s_acc[...], axis=1, keepdims=True)     # (1, 1)
            ss = jnp.sum(ss_acc[...], axis=1, keepdims=True)   # (1, 1)
            m_sh = s * inv_n
            var = jnp.maximum(ss * inv_n - m_sh * m_sh, 0.0)
            mean_ref[...] = c_ref[...] + m_sh
            std_ref[...] = jnp.sqrt(var + eps)

    return kernel


def _rln_norm_kernel(x_ref, mean_ref, std_ref, wb_ref, out_ref):
    # scale/shift formed in-kernel from resident (2,C,1) params + per-sample
    # (1,1) mean/std blocks -> no (N,C,1) HBM intermediates.
    w = wb_ref[0]                                              # (C, 1)
    b = wb_ref[1]                                              # (C, 1)
    inv_std = 1.0 / std_ref[...]                               # (1, 1)
    scale = w * inv_std                                        # (C, 1)
    shift = b - mean_ref[...] * scale                          # (C, 1)
    out_ref[...] = (x_ref[...].astype(jnp.float32) * scale
                    + shift).astype(out_ref.dtype)


def _rln_tiled(x2, wb, eps, vmem_ceiling, hw_tile=None):
    N, C, HW = x2.shape
    n = C * HW
    x_bytes = x2.dtype.itemsize

    if hw_tile is None:
        # aim for ~2 MiB f32 per (C, hw_tile) block, 128-lane aligned
        hw_tile = _clamp(((2 * _MIB) // (4 * C)) // 128 * 128, 512, 16384)
    hw_tile = int(hw_tile)
    if HW <= hw_tile:
        hw_tile = HW                            # single full-extent block
    else:
        hw_tile = max(128, (hw_tile // 128) * 128)

    def _est(t):
        bx = C * t * x_bytes
        bf = C * t * 4
        return max(2 * bx + 3 * bf, 4 * bx + 2 * bf) + 2 * _MIB

    while _est(hw_tile) > vmem_ceiling and hw_tile > 128:
        hw_tile = max(128, ((hw_tile // 2) // 128) * 128)

    n_hw = pl.cdiv(HW, hw_tile)
    vmem_limit = _clamp(_est(hw_tile), 16 * _MIB, vmem_ceiling)

    # pass 1: per-sample mean / std (HW axis is the reduction axis, last)
    mean, std = pl.pallas_call(
        _rln_stats_kernel(eps, 1.0 / n, 1.0 / (C * hw_tile), HW, hw_tile),
        out_shape=(jax.ShapeDtypeStruct((N, 1), jnp.float32),
                   jax.ShapeDtypeStruct((N, 1), jnp.float32)),
        grid_spec=pltpu.PrefetchScalarGridSpec(
            num_scalar_prefetch=0,
            grid=(N, n_hw),
            in_specs=[pl.BlockSpec((None, C, hw_tile), lambda i, t: (i, 0, t))],
            out_specs=(pl.BlockSpec((1, 1), lambda i, t: (i, 0)),
                       pl.BlockSpec((1, 1), lambda i, t: (i, 0))),
            scratch_shapes=[pltpu.VMEM((1, 1), jnp.float32),
                            pltpu.VMEM((1, hw_tile), jnp.float32),
                            pltpu.VMEM((1, hw_tile), jnp.float32)],
        ),
        compiler_params=pltpu.CompilerParams(
            dimension_semantics=("parallel", "arbitrary"),
            vmem_limit_bytes=vmem_limit),
        cost_estimate=pl.CostEstimate(flops=4 * N * C * HW,
                                      transcendentals=N,
                                      bytes_accessed=N * C * HW * x_bytes),
    )(x2)

    # pass 2: streaming normalize, fully parallel grid (megacore-friendly)
    out = pl.pallas_call(
        _rln_norm_kernel,
        out_shape=jax.ShapeDtypeStruct((N, C, HW), x2.dtype),
        grid_spec=pltpu.PrefetchScalarGridSpec(
            num_scalar_prefetch=0,
            grid=(N, n_hw),
            in_specs=[pl.BlockSpec((None, C, hw_tile), lambda i, t: (i, 0, t)),
                      pl.BlockSpec((1, 1), lambda i, t: (i, 0)),
                      pl.BlockSpec((1, 1), lambda i, t: (i, 0)),
                      pl.BlockSpec((2, C, 1), lambda i, t: (0, 0, 0))],
            out_specs=pl.BlockSpec((None, C, hw_tile), lambda i, t: (i, 0, t)),
        ),
        compiler_params=pltpu.CompilerParams(
            dimension_semantics=("parallel", "parallel"),
            vmem_limit_bytes=vmem_limit),
        cost_estimate=pl.CostEstimate(flops=3 * N * C * HW,
                                      transcendentals=0,
                                      bytes_accessed=2 * N * C * HW * x_bytes),
    )(x2, mean, std, wb)
    return out, mean, std


# ---------------------------------------------------------------------------
# Public forward + reference
# ---------------------------------------------------------------------------

def rln_forward(x, weight, bias, meta1_w, meta1_b, meta2_w, meta2_b,
                eps=1e-5, force_tiled=False, hw_tile=None):
    """x: (N, C, H, W); weight/bias: (1, C, 1, 1); meta{1,2}_w: (C, 1, 1, 1);
    meta{1,2}_b: (C,).  Returns (out (N,C,H,W), rescale (N,C,1,1), rebias (N,C,1,1))."""
    N, C, H, W = x.shape
    HW = H * W

    weight_c = weight.reshape(C).astype(jnp.float32)
    bias_c = bias.reshape(C).astype(jnp.float32)

    # C < 8: fold HW onto the sublane axis so tiles are full (8,128) vregs.
    k = 1
    if C < 8:
        kk = 8 // C
        if kk > 1 and HW % kk == 0:
            k = kk
    C_eff, HW_eff = C * k, HW // k
    x2 = x.reshape(N, C_eff, HW_eff)
    w_eff = jnp.repeat(weight_c, k) if k > 1 else weight_c
    b_eff = jnp.repeat(bias_c, k) if k > 1 else bias_c
    wb = jnp.stack([w_eff, b_eff], axis=0)[:, :, None]         # (2, C_eff, 1)

    cap = _vmem_capacity_bytes()
    vmem_ceiling = max(16 * _MIB, int(cap * 0.75))             # ≈48 MiB v7x, ≈96 MiB v5e/v6e
    sample_f32 = C_eff * HW_eff * 4
    fast_sample_budget = int(cap * 0.10)                       # ≈12.8 MiB v5e/v6e, ≈6.4 MiB v7x

    use_fast = (not force_tiled) and (sample_f32 <= fast_sample_budget)

    # v7x (2 TC/chip): with batch < core count the fused grid=(N,) leaves a
    # TensorCore idle; for non-tiny samples take the tiled path whose pass 2
    # parallelizes over (N, HW) tiles.
    cores = _num_tensorcores()
    if use_fast and cores > 1 and N < cores and sample_f32 >= 2 * _MIB:
        use_fast = False

    if use_fast:
        # batch several tiny samples per grid step (~4 MiB blocks) to amortize
        # the per-step overhead and keep DMAs long.
        nb_target = min(4 * _MIB, fast_sample_budget)
        nb = 1
        for d in range(N, 0, -1):
            if N % d == 0 and d * sample_f32 <= nb_target:
                nb = d
                break
        out2, mean, std = _rln_fast(x2, wb, eps, nb, vmem_ceiling)
    else:
        out2, mean, std = _rln_tiled(x2, wb, eps, vmem_ceiling, hw_tile=hw_tile)

    # meta1/meta2 are Conv2d(1, dim, 1) applied to (N,1,1,1) tensors, i.e.
    # per-channel scalar affines of std/mean; trivial O(N*C) work in plain JAX.
    # detach_grad only changes autograd, forward is identical.
    mw1 = meta1_w.reshape(1, C).astype(jnp.float32)
    mb1 = meta1_b.reshape(1, C).astype(jnp.float32)
    mw2 = meta2_w.reshape(1, C).astype(jnp.float32)
    mb2 = meta2_b.reshape(1, C).astype(jnp.float32)
    rescale = (mw1 * std + mb1).reshape(N, C, 1, 1)
    rebias = (mw2 * mean + mb2).reshape(N, C, 1, 1)

    return out2.reshape(N, C, H, W), rescale, rebias


def init_rln_params(dim, key):
    """Deterministic parameter init matching RLN.__init__."""
    k1, k2 = jax.random.split(key)
    weight = jnp.ones((1, dim, 1, 1), jnp.float32)
    bias = jnp.zeros((1, dim, 1, 1), jnp.float32)
    meta1_w = 0.02 * jax.random.truncated_normal(k1, -2.0, 2.0, (dim, 1, 1, 1), jnp.float32)
    meta1_b = jnp.ones((dim,), jnp.float32)
    meta2_w = 0.02 * jax.random.truncated_normal(k2, -2.0, 2.0, (dim, 1, 1, 1), jnp.float32)
    meta2_b = jnp.zeros((dim,), jnp.float32)
    return weight, bias, meta1_w, meta1_b, meta2_w, meta2_b


def rln_reference(x, weight, bias, meta1_w, meta1_b, meta2_w, meta2_b, eps=1e-5):
    mean = jnp.mean(x, axis=(1, 2, 3), keepdims=True)
    std = jnp.sqrt(jnp.mean((x - mean) ** 2, axis=(1, 2, 3), keepdims=True) + eps)
    normalized = (x - mean) / std
    out = normalized * weight + bias
    rescale = meta1_w.reshape(1, -1, 1, 1) * std + meta1_b.reshape(1, -1, 1, 1)
    rebias = meta2_w.reshape(1, -1, 1, 1) * mean + meta2_b.reshape(1, -1, 1, 1)
    return out, rescale, rebias


def _check(name, got, want, atol=2e-5, rtol=2e-5):
    for idx, (g, w) in enumerate(zip(got, want)):
        if not jnp.allclose(g, w, atol=atol, rtol=rtol):
            err = float(jnp.max(jnp.abs(g - w)))
            raise AssertionError(f"{name}[{idx}]: mismatch, max abs err {err}")


if __name__ == "__main__":
    key = jax.random.PRNGKey(0)
    kx, kp, kx2, kx3, kp2 = jax.random.split(key, 5)

    # 1) fused whole-sample path with C<8 sublane folding (C=4 -> (8, 128))
    N, C, H, W = 2, 4, 16, 16
    x = jax.random.normal(kx, (N, C, H, W), jnp.float32)
    params = init_rln_params(C, kp)
    ref = rln_reference(x, *params)
    res_fast = rln_forward(x, *params)
    jax.block_until_ready(res_fast)
    _check("fast-folded", res_fast, ref)

    # 2) tiled two-pass path forced on the same data (single HW tile)
    res_tiled = rln_forward(x, *params, force_tiled=True, hw_tile=128)
    jax.block_until_ready(res_tiled)
    _check("tiled", res_tiled, ref)

    # 3) tiled path with several tiles and a ragged last tile (C=8, HW=400)
    x3 = jax.random.normal(kx3, (2, 8, 20, 20), jnp.float32)
    p8 = init_rln_params(8, kp2)
    res_ragged = rln_forward(x3, *p8, force_tiled=True, hw_tile=128)
    jax.block_until_ready(res_ragged)
    _check("tiled-ragged", res_ragged, rln_reference(x3, *p8))

    # 4) fused path, odd spatial size with folding (C=4, HW=144 -> (8, 72))
    x4 = jax.random.normal(kx2, (N, C, 12, 12), jnp.float32)
    res_odd = rln_forward(x4, *params)
    jax.block_until_ready(res_odd)
    _check("fast-odd", res_odd, rln_reference(x4, *params))

    print("KERNEL_OK")
</pallas_src>

<mosaic_0001>
module attributes {stable_mosaic.version = 11 : i64} {
  func.func @kernel(%arg0: i32, %arg1: memref<2x8x128xf32, #tpu.memory_space<vmem>>, %arg2: memref<2x8x1xf32, #tpu.memory_space<vmem>>, %arg3: memref<2x8x128xf32, #tpu.memory_space<vmem>>, %arg4: memref<2x1xf32, #tpu.memory_space<vmem>>, %arg5: memref<2x1xf32, #tpu.memory_space<vmem>>) attributes {dimension_semantics = [#tpu.dimension_semantics<parallel>], iteration_bounds = array<i64: 1>, scalar_prefetch = 0 : i64, scratch_operands = 0 : i64, tpu.core_type = #tpu.core_type<tc>, window_params = [{transform_indices = @transform_0, window_bounds = array<i64: 2, 8, 128>}, {pipeline_mode = #tpu.pipeline_mode<synchronous>, transform_indices = @transform_1, window_bounds = array<i64: 2, 8, 1>}, {transform_indices = @transform_2, window_bounds = array<i64: 2, 8, 128>}, {transform_indices = @transform_3, window_bounds = array<i64: 2, 1>}, {transform_indices = @transform_4, window_bounds = array<i64: 2, 1>}]} {
    %c0 = arith.constant 0 : index
    %c0_0 = arith.constant 0 : index
    %c0_1 = arith.constant 0 : index
    %0 = vector.load %arg1[%c0, %c0_0, %c0_1] : memref<2x8x128xf32, #tpu.memory_space<vmem>>, vector<2x8x128xf32>
    %cst = arith.constant dense<0.000000e+00> : vector<2x8xf32>
    %1 = vector.multi_reduction <add>, %0, %cst [2] : vector<2x8x128xf32> to vector<2x8xf32>
    %2 = vector.shape_cast %1 : vector<2x8xf32> to vector<2x8x1xf32>
    %cst_2 = arith.constant dense<0.000000e+00> : vector<2x1xf32>
    %3 = vector.multi_reduction <add>, %2, %cst_2 [1] : vector<2x8x1xf32> to vector<2x1xf32>
    %4 = vector.shape_cast %3 : vector<2x1xf32> to vector<2x1x1xf32>
    %cst_3 = arith.constant 9.765625E-4 : f32
    %5 = vector.broadcast %cst_3 : f32 to vector<2x1x1xf32>
    %6 = arith.mulf %4, %5 : vector<2x1x1xf32>
    %7 = vector.broadcast %6 : vector<2x1x1xf32> to vector<2x8x128xf32>
    %8 = arith.subf %0, %7 : vector<2x8x128xf32>
    %9 = arith.mulf %8, %8 : vector<2x8x128xf32>
    %cst_4 = arith.constant dense<0.000000e+00> : vector<2x8xf32>
    %10 = vector.multi_reduction <add>, %9, %cst_4 [2] : vector<2x8x128xf32> to vector<2x8xf32>
    %11 = vector.shape_cast %10 : vector<2x8xf32> to vector<2x8x1xf32>
    %cst_5 = arith.constant dense<0.000000e+00> : vector<2x1xf32>
    %12 = vector.multi_reduction <add>, %11, %cst_5 [1] : vector<2x8x1xf32> to vector<2x1xf32>
    %13 = vector.shape_cast %12 : vector<2x1xf32> to vector<2x1x1xf32>
    %cst_6 = arith.constant 9.765625E-4 : f32
    %14 = vector.broadcast %cst_6 : f32 to vector<2x1x1xf32>
    %15 = arith.mulf %13, %14 : vector<2x1x1xf32>
    %cst_7 = arith.constant 9.99999974E-6 : f32
    %16 = vector.broadcast %cst_7 : f32 to vector<2x1x1xf32>
    %17 = arith.addf %15, %16 : vector<2x1x1xf32>
    %18 = math.rsqrt %17 : vector<2x1x1xf32>
    %cst_8 = arith.constant 9.99999974E-6 : f32
    %19 = vector.broadcast %cst_8 : f32 to vector<2x1x1xf32>
    %20 = arith.addf %15, %19 : vector<2x1x1xf32>
    %21 = math.sqrt %20 : vector<2x1x1xf32>
    %c0_9 = arith.constant 0 : index
    %c0_10 = arith.constant 0 : index
    %c0_11 = arith.constant 0 : index
    %22 = vector.load %arg2[%c0_9, %c0_10, %c0_11] : memref<2x8x1xf32, #tpu.memory_space<vmem>>, vector<1x8x1xf32>
    %23 = vector.shape_cast %22 : vector<1x8x1xf32> to vector<8x1xf32>
    %c1 = arith.constant 1 : index
    %c0_12 = arith.constant 0 : index
    %c0_13 = arith.constant 0 : index
    %24 = vector.load %arg2[%c1, %c0_12, %c0_13] : memref<2x8x1xf32, #tpu.memory_space<vmem>>, vector<1x8x1xf32>
    %25 = vector.shape_cast %24 : vector<1x8x1xf32> to vector<8x1xf32>
    %26 = vector.shape_cast %23 : vector<8x1xf32> to vector<1x8x1xf32>
    %27 = vector.broadcast %26 : vector<1x8x1xf32> to vector<2x8x1xf32>
    %28 = vector.broadcast %18 : vector<2x1x1xf32> to vector<2x8x1xf32>
    %29 = arith.mulf %27, %28 : vector<2x8x1xf32>
    %30 = vector.broadcast %6 : vector<2x1x1xf32> to vector<2x8x1xf32>
    %31 = arith.mulf %30, %29 : vector<2x8x1xf32>
    %32 = vector.shape_cast %25 : vector<8x1xf32> to vector<1x8x1xf32>
    %33 = vector.broadcast %32 : vector<1x8x1xf32> to vector<2x8x1xf32>
    %34 = arith.subf %33, %31 : vector<2x8x1xf32>
    %35 = vector.broadcast %29 : vector<2x8x1xf32> to vector<2x8x128xf32>
    %36 = arith.mulf %0, %35 : vector<2x8x128xf32>
    %37 = vector.broadcast %34 : vector<2x8x1xf32> to vector<2x8x128xf32>
    %38 = arith.addf %36, %37 : vector<2x8x128xf32>
    %c0_14 = arith.constant 0 : index
    %c0_15 = arith.constant 0 : index
    %c0_16 = arith.constant 0 : index
    %39 = vector.load %arg3[%c0_14, %c0_15, %c0_16] : memref<2x8x128xf32, #tpu.memory_space<vmem>>, vector<2x8x128xf32>
    tpu.vector_store %arg3[%c0_14, %c0_15, %c0_16], %38 {strides = array<i32>} : memref<2x8x128xf32, #tpu.memory_space<vmem>>, vector<2x8x128xf32>,
    %40 = vector.shape_cast %6 : vector<2x1x1xf32> to vector<2x1xf32>
    %c0_17 = arith.constant 0 : index
    %c0_18 = arith.constant 0 : index
    %41 = vector.load %arg4[%c0_17, %c0_18] : memref<2x1xf32, #tpu.memory_space<vmem>>, vector<2x1xf32>
    tpu.vector_store %arg4[%c0_17, %c0_18], %40 {strides = array<i32>} : memref<2x1xf32, #tpu.memory_space<vmem>>, vector<2x1xf32>,
    %42 = vector.shape_cast %21 : vector<2x1x1xf32> to vector<2x1xf32>
    %c0_19 = arith.constant 0 : index
    %c0_20 = arith.constant 0 : index
    %43 = vector.load %arg5[%c0_19, %c0_20] : memref<2x1xf32, #tpu.memory_space<vmem>>, vector<2x1xf32>
    tpu.vector_store %arg5[%c0_19, %c0_20], %42 {strides = array<i32>} : memref<2x1xf32, #tpu.memory_space<vmem>>, vector<2x1xf32>,
    return
  }
  func.func @transform_0(%arg0: i32) -> (i32, i32, i32) {
    %c0_i32 = arith.constant 0 : i32
    %c0_i32_0 = arith.constant 0 : i32
    %c0_i32_1 = arith.constant 0 : i32
    return %arg0, %c0_i32, %c0_i32_0 : i32, i32, i32
  }
  func.func @transform_1(%arg0: i32) -> (i32, i32, i32) {
    %c0_i32 = arith.constant 0 : i32
    %c0_i32_0 = arith.constant 0 : i32
    %c0_i32_1 = arith.constant 0 : i32
    %c0_i32_2 = arith.constant 0 : i32
    return %c0_i32, %c0_i32_0, %c0_i32_1 : i32, i32, i32
  }
  func.func @transform_2(%arg0: i32) -> (i32, i32, i32) {
    %c0_i32 = arith.constant 0 : i32
    %c0_i32_0 = arith.constant 0 : i32
    %c0_i32_1 = arith.constant 0 : i32
    return %arg0, %c0_i32, %c0_i32_0 : i32, i32, i32
  }
  func.func @transform_3(%arg0: i32) -> (i32, i32) {
    %c0_i32 = arith.constant 0 : i32
    %c0_i32_0 = arith.constant 0 : i32
    return %arg0, %c0_i32 : i32, i32
  }
  func.func @transform_4(%arg0: i32) -> (i32, i32) {
    %c0_i32 = arith.constant 0 : i32
    %c0_i32_0 = arith.constant 0 : i32
    return %arg0, %c0_i32 : i32, i32
  }
}

</mosaic_0001>

<bundles_post_ra>
// kernel: tpu_custom_call.1
= control target key start
LH: loop header
LB: loop body
LE: loop exit
PB: predicated region body
PF: predicated region fallthrough
CT: control target
= control target key end

     0   :  { %s283_s0 = inlined_call_operand.vmem [shape: f32[2,8,128], index: 0, kind: input, shape index: {}]   ;;  %s284_s1 = inlined_call_operand.vmem [shape: f32[2,8,1], index: 1, kind: input, shape index: {}]   ;;  %s285_s2 = inlined_call_operand.hbm [shape: f32[2,8,128], index: 2, kind: output, shape index: {0}]   ;;  %s286_s3 = inlined_call_operand.vmem [shape: f32[2,1], index: 3, kind: output, shape index: {1}]   ;;  %s287_s4 = inlined_call_operand.vmem [shape: f32[2,1], index: 4, kind: output, shape index: {2}]  }
   0x1   :  { %v246_v0 = vld [vmem:[%s283_s0] sm:$0xff] }
   0x2   :  { %10 = vsyncpa [#allocation3], 0  ;;  %17 = vadd.xlane.f32.xlu0 %v246_v0  ;;  %v252_v1 = vld [vmem:[%s283_s0 + $0x8] sm:$0xff]  ;;  %vm140_vm0 = vcmask 1041409   ;;  %vm143_vm1 = vcmask 1024   ;;  %v214_v23 = vmov 0  }
   0x3   :  { %181 = vset.pattern.permute.xlu2 %v214_v23  ;;  %182 = vset.pattern.permute.xlu0 %v214_v23  ;;  %v103_v49 = vld [vmem:[%s284_s1] sm:$0xff]  ;;  %v176_v55 = vld [vmem:[%s284_s1 + $0x8] sm:$0xff]  ;;  %s215_s24 = smov [#allocation2]   ;;  %s156_s28 = sshll.u32 %s285_s2, 4  ;;  %s157_s28 = int_to_ptr.hbm [resolvable:$true] %s156_s28 }
   0x4   :  { %183 = vset.pattern.permute.xlu1 %v214_v23  ;;  %s154_s25 = sshll.u32 %s215_s24, 4  ;;  %s217_s29 = smov 8   ;;  %s155_s25 = int_to_ptr.vmem [resolvable:$true] %s154_s25 }
   0xa   :  { %19 = vadd.xlane.f32.xlu0 %v252_v1 }
  0x75   :  { %v18_v2 = vpop.xlane.xlu0 %17 }
  0x76   :  { %v21_v3 = vrot.slane %v18_v2, 4 }
  0x78   :  { %v22_v4 = vadd.f32 %v21_v3, %v18_v2 }
  0x7a   :  { %v23_v5 = vrot.slane %v22_v4, 2 }
  0x7c   :  { %v24_v6 = vadd.f32 %v23_v5, %v22_v4 }
  0x7d   :  { %v20_v7 = vpop.xlane.xlu0 %19 }
  0x7e   :  { %v25_v8 = vrot.slane %v24_v6, 1  ;;  %v27_v9 = vrot.slane %v20_v7, 4 }
  0x80   :  { %v28_v10 = vadd.f32 %v27_v9, %v20_v7  ;;  %v26_v11 = vadd.f32 %v25_v8, %v24_v6 }
  0x82   :  { %v29_v12 = vrot.slane %v28_v10, 2  ;;  %v33_v13 = vmul.f32 0.0009765625, %v26_v11 }
  0x84   :  { %v30_v14 = vadd.f32 %v29_v12, %v28_v10  ;;  %v35_v15 = vsub.f32 %v246_v0, %v33_v13 }
  0x86   :  { %v31_v16 = vrot.slane %v30_v14, 1  ;;  %v37_v17 = vmul.f32 %v35_v15, %v35_v15 }
  0x88   :  { %v32_v18 = vadd.f32 %v31_v16, %v30_v14  ;;  %39 = vadd.xlane.f32.xlu1 %v37_v17 }
  0x8a   :  { %v256_v19 = vmul.f32 0.0009765625, %v32_v18 }
  0x8c   :  { %v141_v20 = vsel %vm140_vm0, %v256_v19, %v33_v13  ;;  %v36_v21 = vsub.f32 %v252_v1, %v256_v19 }
  0x8d   :  { %144 = vst.msk [vmem:[%s286_s3] sm:$0x3] %vm143_vm1, %v141_v20 }
  0x8e   :  { %v38_v22 = vmul.f32 %v36_v21, %v36_v21 }
  0x90   :  { %41 = vadd.xlane.f32.xlu1 %v38_v22 }
  0xfb   :  { %v40_v24 = vpop.xlane.xlu1 %39 }
  0xfc   :  { %v43_v25 = vrot.slane %v40_v24, 4 }
  0xfe   :  { %v44_v26 = vadd.f32 %v43_v25, %v40_v24 }
 0x100   :  { %v45_v27 = vrot.slane %v44_v26, 2 }
 0x102   :  { %v46_v28 = vadd.f32 %v45_v27, %v44_v26 }
 0x103   :  { %v42_v29 = vpop.xlane.xlu1 %41 }
 0x104   :  { %v47_v30 = vrot.slane %v46_v28, 1  ;;  %v49_v31 = vrot.slane %v42_v29, 4 }
 0x106   :  { %v48_v32 = vadd.f32 %v47_v30, %v46_v28  ;;  %v50_v33 = vadd.f32 %v49_v31, %v42_v29 }
 0x108   :  { %v55_v34 = vmul.f32 0.0009765625, %v48_v32  ;;  %v51_v35 = vrot.slane %v50_v33, 2 }
 0x10a   :  { %v57_v36 = vadd.f32 1e-05, %v55_v34  ;;  %v52_v37 = vadd.f32 %v51_v35, %v50_v33 }
 0x10c   :  { %184 = vrsqrt.f32 %v57_v36  ;;  %v53_v38 = vrot.slane %v52_v37, 1  ;;  %vm65_vm3 = vweird.f32 %v57_v36  ;;  %vm86_vm7 = vcmp.eq.f32.partialorder %v57_v36, inf }
 0x10d   :  { %v89_v2 = vand.u32 2147483648, %v57_v36  ;;  %vm88_vm10 = vcmp.eq.f32.partialorder %v57_v36, 0.0 }
 0x10e   :  { %v54_v39 = vadd.f32 %v53_v38, %v52_v37 }
 0x110   :  { %v56_v40 = vmul.f32 0.0009765625, %v54_v39 }
 0x112   :  { %v185_v41 = vpop.eup %184  ;;  %v58_v42 = vadd.f32 1e-05, %v56_v40 }
 0x113   :  { %v60_v43 = vmul.f32 %v185_v41, %v57_v36  ;;  %vm66_vm2 = vweird.f32 %v185_v41 }
 0x114   :  { %186 = vrsqrt.f32 %v58_v42  ;;  %vm67_vm4 = vmor %vm65_vm3, %vm66_vm2  ;;  %vm75_vm6 = vweird.f32 %v58_v42  ;;  %vm98_vm9 = vcmp.eq.f32.partialorder %v58_v42, inf  ;;  %v101_v3 = vand.u32 2147483648, %v58_v42 }
 0x115   :  { %v61_v44 = vmul.f32 %v185_v41, %v60_v43  ;;  %vm100_vm11 = vcmp.eq.f32.partialorder %v58_v42, 0.0 }
 0x117   :  { %v62_v45 = vmul.f32 0.5, %v61_v44 }
 0x119   :  { %v63_v46 = vsub.f32 1.5, %v62_v45 }
 0x11a   :  { %v187_v47 = vpop.eup %186 }
 0x11b   :  { %v64_v48 = vmul.f32 %v185_v41, %v63_v46  ;;  %v70_v50 = vmul.f32 %v187_v47, %v58_v42  ;;  %vm76_vm5 = vweird.f32 %v187_v47 }
 0x11c   :  { %vm77_vm8 = vmor %vm75_vm6, %vm76_vm5 }
 0x11d   :  { %v68_v51 = vsel %vm67_vm4, %v185_v41, %v64_v48  ;;  %v71_v52 = vmul.f32 %v187_v47, %v70_v50  ;;  %v85_v57 = vmul.f32 %v64_v48, %v57_v36 }
 0x11e   :  { %v106_v53 = vmul.f32 %v103_v49, %v68_v51 }
 0x11f   :  { %v72_v54 = vmul.f32 0.5, %v71_v52  ;;  %v87_v61 = vsel %vm86_vm7, %v57_v36, %v85_v57 }
 0x120   :  { %114 = vperm.xlu2 %181, %v106_v53   ;;  %v108_v56 = vmul.f32 %v106_v53, %v33_v13  ;;  %v90_v6 = vsel %vm88_vm10, %v89_v2, %v87_v61 }
 0x121   :  { %v73_v58 = vsub.f32 1.5, %v72_v54 }
 0x122   :  { %v110_v59 = vsub.f32 %v176_v55, %v108_v56 }
 0x123   :  { %v74_v60 = vmul.f32 %v187_v47, %v73_v58 }
 0x124   :  { %126 = vperm.xlu0 %182, %v110_v59  }
 0x125   :  { %v78_v62 = vsel %vm77_vm8, %v187_v47, %v74_v60  ;;  %v97_v63 = vmul.f32 %v74_v60, %v58_v42 }
 0x126   :  { %v107_v4 = vmul.f32 %v103_v49, %v78_v62 }
 0x127   :  { %v99_v5 = vsel %vm98_vm9, %v58_v42, %v97_v63 }
 0x128   :  { %v102_v7 = vsel %vm100_vm11, %v101_v3, %v99_v5  ;;  %v109_v8 = vmul.f32 %v107_v4, %v256_v19  ;;  %119 = vperm.xlu2 %181, %v107_v4  }
 0x129   :  { %v147_v9 = vsel %vm140_vm0, %v102_v7, %v90_v6 }
 0x12a   :  { %149 = vst.msk [vmem:[%s287_s4] sm:$0x3] %vm143_vm1, %v147_v9  ;;  %v111_v10 = vsub.f32 %v176_v55, %v109_v8  ;;  %s216_s4 = smov 128  }
 0x12c   :  { %131 = vperm.xlu1 %183, %v111_v10  }
 0x17a   :  { %v115_v11 = vpop.permute.xlu2 %114 }
 0x17b   :  { %v122_v12 = vmul.f32 %v115_v11, %v246_v0 }
 0x182   :  { %v120_v15 = vpop.permute.xlu2 %119 }
 0x183   :  { %v123_v16 = vmul.f32 %v120_v15, %v252_v1 }
 0x196   :  { %v127_v13 = vpop.permute.xlu0 %126 }
 0x197   :  { %v134_v14 = vadd.f32 %v127_v13, %v122_v12 }
 0x199   :  { %136 = vst [vmem:[#allocation2] sm:$0xff] %v134_v14 }
 0x19e   :  { %v132_v17 = vpop.permute.xlu1 %131 }
 0x19f   :  { %v135_v18 = vadd.f32 %v132_v17, %v123_v16 }
 0x1a1   :  { %137 = vst [vmem:[#allocation2 + $0x8] sm:$0xff] %v135_v18 }
 0x1a2   :  { %162 = dma.vmem_to_hbm [thread:$0]  %s155_s25, 256, %s157_s28, [#allocation3], %s216_s4, %s216_s4, %s217_s29  }
 0x1a3   :  { %212 = dma.done.wait [#allocation3], 256  }
 0x1a4   :  { %213 = vsyncadd [#allocation3], 4294967040 }
 0x1a5   :  { %175 = vsyncpa [#allocation3], 1 }

</bundles_post_ra>
